<compile_context>
chip_gen: v7x
topology: tpu7x:2x2x1
jax: 0.10.0
libtpu: 0.0.40
codegen_flags: <defaults>
</compile_context>

<pallas_src>
import functools

import numpy as np
import jax
import jax.numpy as jnp
from jax import lax
from jax.experimental import pallas as pl
from jax.experimental.pallas import tpu as pltpu

EPS = 1e-5
VMEM_LIMIT = 32 * 1024 * 1024     # explicit scoped-VMEM cap (safe on v5e/v6e/v7x)


# ----------------------------- small helpers -----------------------------

def _round_up(x, m):
    return (x + m - 1) // m * m


def _pad2d(a, rows, cols):
    return jnp.pad(a, ((0, rows - a.shape[0]), (0, cols - a.shape[1])))


def _tile_spec(tm, cols):
    # one (tm, cols) row-tile per grid step
    return pl.BlockSpec((tm, cols), lambda i: (i, 0))


def _resident_spec(shape):
    # same block every grid step -> stays resident in VMEM (weights / per-channel vectors /
    # stats accumulators)
    return pl.BlockSpec(shape, lambda i: (0,) * len(shape))


def _mosaic(semantics):
    return pltpu.CompilerParams(dimension_semantics=semantics,
                                vmem_limit_bytes=VMEM_LIMIT)


def _scale_shift(inv_m, s, q, g, b):
    # fold batch-norm (batch stats) into a per-channel affine:  y*scale + shift
    mu = s * inv_m
    var = q * inv_m - mu * mu
    scale = g * lax.rsqrt(var + EPS)          # rsqrt rides the EUP slot
    return scale, b - mu * scale


# ----------------------------- Pallas kernels -----------------------------

def _mm_stats_kernel(p_ref, w_ref, y_ref, s_ref, q_ref):
    # pass 1: y_tile = patches_tile @ W (f32 acc); accumulate per-channel sum / sumsq.
    y = jnp.dot(p_ref[...], w_ref[...], preferred_element_type=jnp.float32)
    y_ref[...] = y.astype(y_ref.dtype)

    @pl.when(pl.program_id(0) == 0)
    def _():
        s_ref[...] = jnp.zeros_like(s_ref)
        q_ref[...] = jnp.zeros_like(q_ref)

    s_ref[...] += jnp.sum(y, axis=0, keepdims=True)
    q_ref[...] += jnp.sum(y * y, axis=0, keepdims=True)


def _mm_stats_proj_kernel(p_ref, w_ref, xs_ref, ws_ref,
                          y_ref, s_ref, q_ref, ss_ref, qs_ref):
    # pass 1 (projection shortcut fused): conv2 matmul + 1x1 shortcut matmul stats.
    y = jnp.dot(p_ref[...], w_ref[...], preferred_element_type=jnp.float32)
    ys = jnp.dot(xs_ref[...], ws_ref[...], preferred_element_type=jnp.float32)
    y_ref[...] = y.astype(y_ref.dtype)

    @pl.when(pl.program_id(0) == 0)
    def _():
        s_ref[...] = jnp.zeros_like(s_ref)
        q_ref[...] = jnp.zeros_like(q_ref)
        ss_ref[...] = jnp.zeros_like(ss_ref)
        qs_ref[...] = jnp.zeros_like(qs_ref)

    s_ref[...] += jnp.sum(y, axis=0, keepdims=True)
    q_ref[...] += jnp.sum(y * y, axis=0, keepdims=True)
    ss_ref[...] += jnp.sum(ys, axis=0, keepdims=True)
    qs_ref[...] += jnp.sum(ys * ys, axis=0, keepdims=True)


def _bn_relu_kernel(inv_m, y_ref, s_ref, q_ref, g_ref, b_ref, o_ref):
    # pass 2: out = relu(bn(y))
    scale, shift = _scale_shift(inv_m, s_ref[...], q_ref[...], g_ref[...], b_ref[...])
    y = y_ref[...].astype(jnp.float32)
    o_ref[...] = jnp.maximum(y * scale + shift, 0.0).astype(o_ref.dtype)


def _bn_add_relu_id_kernel(inv_m, y_ref, s_ref, q_ref, g_ref, b_ref, xs_ref, o_ref):
    # pass 2: out = relu(bn2(y) + x)   (identity shortcut)
    scale, shift = _scale_shift(inv_m, s_ref[...], q_ref[...], g_ref[...], b_ref[...])
    y = y_ref[...].astype(jnp.float32)
    o_ref[...] = jnp.maximum(y * scale + shift + xs_ref[...].astype(jnp.float32),
                             0.0).astype(o_ref.dtype)


def _bn_add_relu_proj_kernel(inv_m, y_ref, s_ref, q_ref, g_ref, b_ref,
                             xs_ref, ws_ref, ss_ref, qs_ref, gs_ref, bs_ref, o_ref):
    # pass 2: out = relu(bn2(y) + bn_s(x @ ws))   (projection shortcut; 1x1 recomputed
    # per tile — cheaper than storing/reloading the raw shortcut activations)
    scale2, shift2 = _scale_shift(inv_m, s_ref[...], q_ref[...], g_ref[...], b_ref[...])
    scales, shifts = _scale_shift(inv_m, ss_ref[...], qs_ref[...], gs_ref[...], bs_ref[...])
    o2 = y_ref[...].astype(jnp.float32) * scale2 + shift2
    ys = jnp.dot(xs_ref[...], ws_ref[...], preferred_element_type=jnp.float32)
    o_ref[...] = jnp.maximum(o2 + ys * scales + shifts, 0.0).astype(o_ref.dtype)


# ----------------------------- pallas_call wrappers -----------------------------

def _conv_stats(p, w, tm, y_dtype):
    Mp, K = p.shape
    Cp = w.shape[1]
    cost = pl.CostEstimate(
        flops=2 * Mp * K * Cp, transcendentals=0,
        bytes_accessed=int(p.size * p.dtype.itemsize + w.size * w.dtype.itemsize
                           + Mp * Cp * jnp.dtype(y_dtype).itemsize))
    return pl.pallas_call(
        _mm_stats_kernel,
        grid=(Mp // tm,),
        in_specs=[_tile_spec(tm, K), _resident_spec((K, Cp))],
        out_specs=[_tile_spec(tm, Cp),
                   _resident_spec((1, Cp)), _resident_spec((1, Cp))],
        out_shape=[jax.ShapeDtypeStruct((Mp, Cp), y_dtype),
                   jax.ShapeDtypeStruct((1, Cp), jnp.float32),
                   jax.ShapeDtypeStruct((1, Cp), jnp.float32)],
        compiler_params=_mosaic(("arbitrary",)),   # stats accumulator -> reduction axis
        cost_estimate=cost,
    )(p, w)


def _conv_stats_proj(p, w, xs, ws, tm, y_dtype):
    Mp, K = p.shape
    Cp = w.shape[1]
    Cin = xs.shape[1]
    cost = pl.CostEstimate(
        flops=2 * Mp * (K + Cin) * Cp, transcendentals=0,
        bytes_accessed=int((p.size + xs.size) * p.dtype.itemsize
                           + (w.size + ws.size) * w.dtype.itemsize
                           + Mp * Cp * jnp.dtype(y_dtype).itemsize))
    return pl.pallas_call(
        _mm_stats_proj_kernel,
        grid=(Mp // tm,),
        in_specs=[_tile_spec(tm, K), _resident_spec((K, Cp)),
                  _tile_spec(tm, Cin), _resident_spec((Cin, Cp))],
        out_specs=[_tile_spec(tm, Cp)] + [_resident_spec((1, Cp))] * 4,
        out_shape=[jax.ShapeDtypeStruct((Mp, Cp), y_dtype)]
                  + [jax.ShapeDtypeStruct((1, Cp), jnp.float32)] * 4,
        compiler_params=_mosaic(("arbitrary",)),
        cost_estimate=cost,
    )(p, w, xs, ws)


def _bn_relu(y, s, q, g, b, tm, inv_m, o_dtype):
    Mp, Cp = y.shape
    cost = pl.CostEstimate(
        flops=4 * Mp * Cp, transcendentals=Cp,
        bytes_accessed=int(Mp * Cp * (y.dtype.itemsize + jnp.dtype(o_dtype).itemsize)))
    return pl.pallas_call(
        functools.partial(_bn_relu_kernel, inv_m),
        grid=(Mp // tm,),
        in_specs=[_tile_spec(tm, Cp)] + [_resident_spec((1, Cp))] * 4,
        out_specs=_tile_spec(tm, Cp),
        out_shape=jax.ShapeDtypeStruct((Mp, Cp), o_dtype),
        compiler_params=_mosaic(("parallel",)),    # independent tiles -> megacore-shardable
        cost_estimate=cost,
    )(y, s, q, g, b)


def _bn_add_relu_id(y, s, q, g, b, xs, tm, inv_m):
    Mp, Cp = y.shape
    cost = pl.CostEstimate(
        flops=5 * Mp * Cp, transcendentals=Cp,
        bytes_accessed=int(Mp * Cp * (y.dtype.itemsize + xs.dtype.itemsize + 4)))
    return pl.pallas_call(
        functools.partial(_bn_add_relu_id_kernel, inv_m),
        grid=(Mp // tm,),
        in_specs=[_tile_spec(tm, Cp)] + [_resident_spec((1, Cp))] * 4
                 + [_tile_spec(tm, Cp)],
        out_specs=_tile_spec(tm, Cp),
        out_shape=jax.ShapeDtypeStruct((Mp, Cp), jnp.float32),
        compiler_params=_mosaic(("parallel",)),
        cost_estimate=cost,
    )(y, s, q, g, b, xs)


def _bn_add_relu_proj(y, s, q, g, b, xs, ws, ss, qs, gs, bs, tm, inv_m):
    Mp, Cp = y.shape
    Cin = xs.shape[1]
    cost = pl.CostEstimate(
        flops=2 * Mp * Cin * Cp + 7 * Mp * Cp, transcendentals=2 * Cp,
        bytes_accessed=int(Mp * Cp * (y.dtype.itemsize + 4)
                           + Mp * Cin * xs.dtype.itemsize))
    return pl.pallas_call(
        functools.partial(_bn_add_relu_proj_kernel, inv_m),
        grid=(Mp // tm,),
        in_specs=[_tile_spec(tm, Cp)] + [_resident_spec((1, Cp))] * 4
                 + [_tile_spec(tm, Cin), _resident_spec((Cin, Cp))]
                 + [_resident_spec((1, Cp))] * 4,
        out_specs=_tile_spec(tm, Cp),
        out_shape=jax.ShapeDtypeStruct((Mp, Cp), jnp.float32),
        compiler_params=_mosaic(("parallel",)),
        cost_estimate=cost,
    )(y, s, q, g, b, xs, ws, ss, qs, gs, bs)


# ----------------------------- plain-JAX glue -----------------------------

def _im2col_3x3(x_nhwc, stride):
    # pure data-movement glue (spatial padding + patch extraction) kept in plain JAX.
    N, H, W, C = x_nhwc.shape
    Ho = (H + 2 - 3) // stride + 1
    Wo = (W + 2 - 3) // stride + 1
    xp = jnp.pad(x_nhwc, ((0, 0), (1, 1), (1, 1), (0, 0)))
    cols = []
    for dy in range(3):
        for dx in range(3):
            cols.append(xp[:, dy:dy + stride * (Ho - 1) + 1:stride,
                            dx:dx + stride * (Wo - 1) + 1:stride, :])
    patches = jnp.concatenate(cols, axis=-1)        # (N, Ho, Wo, 9*C), (dy,dx,c) order
    return patches.reshape(N * Ho * Wo, 9 * C), Ho, Wo


def basic_block_forward(x_nchw, params, stride=1, *, tm=256,
                        compute_dtype=jnp.bfloat16):
    x = jnp.transpose(x_nchw, (0, 2, 3, 1)).astype(jnp.float32)     # NCHW -> NHWC
    N, H, W, Cin = x.shape
    planes = params["w1"].shape[-1]
    Cp = _round_up(planes, 128)            # lane-dense output channels (128-lane vregs)

    # ------------- stage 1: relu(bn1(conv1(x))) -------------
    p1, Ho, Wo = _im2col_3x3(x, stride)
    M = N * Ho * Wo
    Mp = _round_up(M, tm)                  # zero rows don't perturb sum/sumsq stats
    inv_m = 1.0 / M
    K1 = _round_up(9 * Cin, 8)

    p1 = _pad2d(p1.astype(compute_dtype), Mp, K1)
    w1 = _pad2d(params["w1"].reshape(9 * Cin, planes).astype(compute_dtype), K1, Cp)
    g1 = _pad2d(params["g1"], 1, Cp)
    b1 = _pad2d(params["b1"], 1, Cp)

    y1, s1, q1 = _conv_stats(p1, w1, tm, compute_dtype)
    h1 = _bn_relu(y1, s1, q1, g1, b1, tm, inv_m, compute_dtype)
    h1 = h1[:M, :planes].reshape(N, Ho, Wo, planes)

    # ------------- stage 2: relu(bn2(conv2(h1)) + shortcut(x)) -------------
    p2, _, _ = _im2col_3x3(h1, 1)
    K2 = _round_up(9 * planes, 8)
    p2 = _pad2d(p2.astype(compute_dtype), Mp, K2)
    w2 = _pad2d(params["w2"].reshape(9 * planes, planes).astype(compute_dtype), K2, Cp)
    g2 = _pad2d(params["g2"], 1, Cp)
    b2 = _pad2d(params["b2"], 1, Cp)

    if stride != 1 or Cin != planes:
        # projection shortcut: bn_s(conv1x1_stride(x)), fused into the stage-2 tiles
        xs = x[:, ::stride, ::stride, :].reshape(M, Cin)
        xs = _pad2d(xs.astype(compute_dtype), Mp, Cin)
        ws = _pad2d(params["ws"].astype(compute_dtype), Cin, Cp)
        gs = _pad2d(params["gs"], 1, Cp)
        bs = _pad2d(params["bs"], 1, Cp)
        y2, s2, q2, ss, qs = _conv_stats_proj(p2, w2, xs, ws, tm, compute_dtype)
        out = _bn_add_relu_proj(y2, s2, q2, g2, b2, xs, ws, ss, qs, gs, bs, tm, inv_m)
    else:
        # identity shortcut (added in f32)
        xs = _pad2d(x.reshape(M, planes), Mp, Cp)
        y2, s2, q2 = _conv_stats(p2, w2, tm, compute_dtype)
        out = _bn_add_relu_id(y2, s2, q2, g2, b2, xs, tm, inv_m)

    out = out[:M, :planes].reshape(N, Ho, Wo, planes)
    return jnp.transpose(out, (0, 3, 1, 2))            # NHWC -> NCHW


# ----------------------------- pure-JAX reference -----------------------------

def basic_block_ref(x_nchw, params, stride=1):
    x = jnp.transpose(x_nchw, (0, 2, 3, 1)).astype(jnp.float32)
    Cin = x.shape[-1]
    planes = params["w1"].shape[-1]
    dn = ('NHWC', 'HWIO', 'NHWC')

    def bn(y, g, b):
        mu = jnp.mean(y, axis=(0, 1, 2), keepdims=True)
        var = jnp.mean((y - mu) ** 2, axis=(0, 1, 2), keepdims=True)
        return (y - mu) / jnp.sqrt(var + EPS) * g.reshape(1, 1, 1, -1) + b.reshape(1, 1, 1, -1)

    h = lax.conv_general_dilated(x, params["w1"], (stride, stride), [(1, 1), (1, 1)],
                                 dimension_numbers=dn)
    h = jax.nn.relu(bn(h, params["g1"], params["b1"]))
    o = lax.conv_general_dilated(h, params["w2"], (1, 1), [(1, 1), (1, 1)],
                                 dimension_numbers=dn)
    o = bn(o, params["g2"], params["b2"])
    if stride != 1 or Cin != planes:
        s = lax.conv_general_dilated(x, params["ws"].reshape(1, 1, Cin, planes),
                                     (stride, stride), [(0, 0), (0, 0)],
                                     dimension_numbers=dn)
        s = bn(s, params["gs"], params["bs"])
    else:
        s = x
    return jnp.transpose(jax.nn.relu(o + s), (0, 3, 1, 2))


# ----------------------------- parameters -----------------------------

def init_params(key, in_planes, planes):
    ks = jax.random.split(key, 9)
    return {
        # conv weights kept in HWIO; PyTorch (O,I,3,3) == transpose(3,2,1,0) of these.
        "w1": 0.1 * jax.random.normal(ks[0], (3, 3, in_planes, planes), jnp.float32),
        "g1": 1.0 + 0.1 * jax.random.normal(ks[1], (1, planes), jnp.float32),
        "b1": 0.1 * jax.random.normal(ks[2], (1, planes), jnp.float32),
        "w2": 0.1 * jax.random.normal(ks[3], (3, 3, planes, planes), jnp.float32),
        "g2": 1.0 + 0.1 * jax.random.normal(ks[4], (1, planes), jnp.float32),
        "b2": 0.1 * jax.random.normal(ks[5], (1, planes), jnp.float32),
        "ws": 0.1 * jax.random.normal(ks[6], (in_planes, planes), jnp.float32),
        "gs": 1.0 + 0.1 * jax.random.normal(ks[7], (1, planes), jnp.float32),
        "bs": 0.1 * jax.random.normal(ks[8], (1, planes), jnp.float32),
    }


if __name__ == "__main__":
    key = jax.random.PRNGKey(0)

    configs = [
        # (N, in_planes, planes, H, W, stride)
        (2, 4, 8, 16, 16, 1),    # channel change -> 1x1 projection shortcut
        (2, 8, 8, 16, 16, 1),    # identity shortcut
        (2, 4, 8, 16, 16, 2),    # strided projection shortcut
    ]

    for cfg_i, (N, in_planes, planes, H, W, stride) in enumerate(configs):
        kx, kp = jax.random.split(jax.random.fold_in(key, cfg_i))
        x = jax.random.normal(kx, (N, in_planes, H, W), jnp.float32)   # NCHW like PyTorch
        params = init_params(kp, in_planes, planes)

        ref = jax.block_until_ready(basic_block_ref(x, params, stride=stride))

        # exact-algorithm check: f32 matmul operands, tight tolerance
        out32 = jax.block_until_ready(
            basic_block_forward(x, params, stride=stride, compute_dtype=jnp.float32))
        np.testing.assert_allclose(np.asarray(out32), np.asarray(ref),
                                   rtol=2e-3, atol=2e-3)

        Ho = (H + 2 - 3) // stride + 1
        Wo = (W + 2 - 3) // stride + 1
        assert out32.shape == (N, planes, Ho, Wo)

        # fast path (default): bf16 matmul operands, f32 stats/epilogue; loose tolerance
        # against the all-f32 reference.
        if cfg_i == 0:
            outbf = jax.block_until_ready(
                basic_block_forward(x, params, stride=stride,
                                    compute_dtype=jnp.bfloat16))
            np.testing.assert_allclose(np.asarray(outbf), np.asarray(ref),
                                       rtol=1e-1, atol=1e-1)

    print("KERNEL_OK")
</pallas_src>

<mosaic_0001>
module attributes {stable_mosaic.version = 11 : i64} {
  func.func @_mm_stats_kernel(%arg0: i32, %arg1: memref<256x40xf32, #tpu.memory_space<vmem>>, %arg2: memref<40x128xf32, #tpu.memory_space<vmem>>, %arg3: memref<256x128xf32, #tpu.memory_space<vmem>>, %arg4: memref<1x128xf32, #tpu.memory_space<vmem>>, %arg5: memref<1x128xf32, #tpu.memory_space<vmem>>) attributes {dimension_semantics = [#tpu.dimension_semantics<arbitrary>], iteration_bounds = array<i64: 2>, scalar_prefetch = 0 : i64, scratch_operands = 0 : i64, tpu.core_type = #tpu.core_type<tc>, window_params = [{transform_indices = @transform_0, window_bounds = array<i64: 256, 40>}, {pipeline_mode = #tpu.pipeline_mode<synchronous>, transform_indices = @transform_1, window_bounds = array<i64: 40, 128>}, {transform_indices = @transform_2, window_bounds = array<i64: 256, 128>}, {pipeline_mode = #tpu.pipeline_mode<synchronous>, transform_indices = @transform_3, window_bounds = array<i64: 1, 128>}, {pipeline_mode = #tpu.pipeline_mode<synchronous>, transform_indices = @transform_4, window_bounds = array<i64: 1, 128>}]} {
    %c0 = arith.constant 0 : index
    %c0_0 = arith.constant 0 : index
    %0 = vector.load %arg1[%c0, %c0_0] : memref<256x40xf32, #tpu.memory_space<vmem>>, vector<256x40xf32>
    %c0_1 = arith.constant 0 : index
    %c0_2 = arith.constant 0 : index
    %1 = vector.load %arg2[%c0_1, %c0_2] : memref<40x128xf32, #tpu.memory_space<vmem>>, vector<40x128xf32>
    %cst = arith.constant dense<0.000000e+00> : vector<256x128xf32>
    %2 = tpu.matmul %0, %1, %cst {dimension_numbers = #tpu.dot_dimension_numbers<[1], [0], [0], [1], [0, 0, 1, 1], [], []>} : vector<256x40xf32>, vector<40x128xf32>, vector<256x128xf32> -> vector<256x128xf32>
    %c0_3 = arith.constant 0 : index
    %c0_4 = arith.constant 0 : index
    %3 = vector.load %arg3[%c0_3, %c0_4] : memref<256x128xf32, #tpu.memory_space<vmem>>, vector<256x128xf32>
    tpu.vector_store %arg3[%c0_3, %c0_4], %2 {strides = array<i32>} : memref<256x128xf32, #tpu.memory_space<vmem>>, vector<256x128xf32>,
    %c0_i32 = arith.constant 0 : i32
    %4 = arith.cmpi eq, %arg0, %c0_i32 : i32
    %5 = arith.extui %4 : i1 to i32
    %c0_i32_5 = arith.constant 0 : i32
    %6 = arith.cmpi ne, %5, %c0_i32_5 : i32
    scf.if %6 {
      %cst_16 = arith.constant 0.000000e+00 : f32
      %18 = vector.broadcast %cst_16 : f32 to vector<1x128xf32>
      %c0_17 = arith.constant 0 : index
      %c0_18 = arith.constant 0 : index
      %19 = vector.load %arg4[%c0_17, %c0_18] : memref<1x128xf32, #tpu.memory_space<vmem>>, vector<1x128xf32>
      tpu.vector_store %arg4[%c0_17, %c0_18], %18 {strides = array<i32>} : memref<1x128xf32, #tpu.memory_space<vmem>>, vector<1x128xf32>,
      %cst_19 = arith.constant 0.000000e+00 : f32
      %20 = vector.broadcast %cst_19 : f32 to vector<1x128xf32>
      %c0_20 = arith.constant 0 : index
      %c0_21 = arith.constant 0 : index
      %21 = vector.load %arg5[%c0_20, %c0_21] : memref<1x128xf32, #tpu.memory_space<vmem>>, vector<1x128xf32>
      tpu.vector_store %arg5[%c0_20, %c0_21], %20 {strides = array<i32>} : memref<1x128xf32, #tpu.memory_space<vmem>>, vector<1x128xf32>,
    } else {
    }
    %c0_6 = arith.constant 0 : index
    %c0_7 = arith.constant 0 : index
    %7 = vector.load %arg4[%c0_6, %c0_7] : memref<1x128xf32, #tpu.memory_space<vmem>>, vector<1x128xf32>
    %cst_8 = arith.constant dense<0.000000e+00> : vector<128xf32>
    %8 = vector.multi_reduction <add>, %2, %cst_8 [0] : vector<256x128xf32> to vector<128xf32>
    %9 = vector.shape_cast %8 : vector<128xf32> to vector<1x128xf32>
    %10 = arith.addf %7, %9 : vector<1x128xf32>
    %c0_9 = arith.constant 0 : index
    %c0_10 = arith.constant 0 : index
    %11 = vector.load %arg4[%c0_9, %c0_10] : memref<1x128xf32, #tpu.memory_space<vmem>>, vector<1x128xf32>
    tpu.vector_store %arg4[%c0_9, %c0_10], %10 {strides = array<i32>} : memref<1x128xf32, #tpu.memory_space<vmem>>, vector<1x128xf32>,
    %c0_11 = arith.constant 0 : index
    %c0_12 = arith.constant 0 : index
    %12 = vector.load %arg5[%c0_11, %c0_12] : memref<1x128xf32, #tpu.memory_space<vmem>>, vector<1x128xf32>
    %13 = arith.mulf %2, %2 : vector<256x128xf32>
    %cst_13 = arith.constant dense<0.000000e+00> : vector<128xf32>
    %14 = vector.multi_reduction <add>, %13, %cst_13 [0] : vector<256x128xf32> to vector<128xf32>
    %15 = vector.shape_cast %14 : vector<128xf32> to vector<1x128xf32>
    %16 = arith.addf %12, %15 : vector<1x128xf32>
    %c0_14 = arith.constant 0 : index
    %c0_15 = arith.constant 0 : index
    %17 = vector.load %arg5[%c0_14, %c0_15] : memref<1x128xf32, #tpu.memory_space<vmem>>, vector<1x128xf32>
    tpu.vector_store %arg5[%c0_14, %c0_15], %16 {strides = array<i32>} : memref<1x128xf32, #tpu.memory_space<vmem>>, vector<1x128xf32>,
    return
  }
  func.func @transform_0(%arg0: i32) -> (i32, i32) {
    %c0_i32 = arith.constant 0 : i32
    %c0_i32_0 = arith.constant 0 : i32
    return %arg0, %c0_i32 : i32, i32
  }
  func.func @transform_1(%arg0: i32) -> (i32, i32) {
    %c0_i32 = arith.constant 0 : i32
    %c0_i32_0 = arith.constant 0 : i32
    %c0_i32_1 = arith.constant 0 : i32
    return %c0_i32, %c0_i32_0 : i32, i32
  }
  func.func @transform_2(%arg0: i32) -> (i32, i32) {
    %c0_i32 = arith.constant 0 : i32
    %c0_i32_0 = arith.constant 0 : i32
    return %arg0, %c0_i32 : i32, i32
  }
  func.func @transform_3(%arg0: i32) -> (i32, i32) {
    %c0_i32 = arith.constant 0 : i32
    %c0_i32_0 = arith.constant 0 : i32
    %c0_i32_1 = arith.constant 0 : i32
    return %c0_i32, %c0_i32_0 : i32, i32
  }
  func.func @transform_4(%arg0: i32) -> (i32, i32) {
    %c0_i32 = arith.constant 0 : i32
    %c0_i32_0 = arith.constant 0 : i32
    %c0_i32_1 = arith.constant 0 : i32
    return %c0_i32, %c0_i32_0 : i32, i32
  }
}

</mosaic_0001>

<bundles_post_ra>
// kernel: tpu_custom_call.1
= control target key start
LH: loop header
LB: loop body
LE: loop exit
PB: predicated region body
PF: predicated region fallthrough
CT: control target
= control target key end

     0   :  { %10 = vsyncpa [#allocation3], 0  ;;  %s1646_s0 = inlined_call_operand.vmem [shape: f32[512,40], index: 0, kind: input, shape index: {}]   ;;  %s1647_s1 = inlined_call_operand.vmem [shape: f32[40,128], index: 1, kind: input, shape index: {}]   ;;  %s1648_s2 = inlined_call_operand.hbm [shape: f32[512,128], index: 2, kind: output, shape index: {0}]   ;;  %s1649_s3 = inlined_call_operand.hbm [shape: f32[1,128], index: 3, kind: output, shape index: {1}]   ;;  %s1650_s4 = inlined_call_operand.hbm [shape: f32[1,128], index: 4, kind: output, shape index: {2}]  }
   0x1   :  { %12 = vsyncpa [#allocation3 + $0x1], 0 }
   0x2   :  { %13 = vsyncpa [#allocation5], 0  ;;  %s1189_s15 = smov 0   ;;  %s1191_s16 = smov 0  }
   0x3   :  { %s1193_s17 = smov 0   ;;  %s1195_s18 = smov 0  }
   0x4 LB: > { %s1210_s19 = sadd.s32 4294967295, %s1156_s18   ;;  %s823_s20 = sadd.s32 4294967294, %s1156_s18   ;;  %s1156_s18 = sphi %s1195_s18, %s1656_s18   ;;  %s1152_s17 = sphi %s1193_s17, %s1655_s17   ;;  %s1148_s16 = sphi %s1191_s16, %s1654_s16   ;;  %s1144_s15 = sphi %s1189_s15, %s1653_s15  }
   0x5   : > { %s1214_s21 = sadd.s32 1, %s1156_s18   ;;  %s73_s22 = sadd.s32 1, %s1152_s17 }
   0x6   : > { %s70_s23 = ssub.s32 %s1156_s18, %s1214_s21  ;;  %p83_p0 = scmp.ne.s32.totalorder %s1152_s17, %s1148_s16 }
   0x7   : > { %p71_p1 = scmp.eq.s32.totalorder %s70_s23, 0  ;;  %p84_p2 = scmp.eq.s32.totalorder %s1210_s19, 1 }
   0x8   : > { %p89_p3 = scmp.ne.s32.totalorder %s1148_s16, %s1144_s15  ;;  %p90_p4 = scmp.eq.s32.totalorder %s823_s20, 1 }
   0x9   : > { %s1225_s24 = scalar_select %p71_p1, %s1152_s17, %s73_s22  }
   0xa   : > { %p1229_p5 = por %p84_p2, %p83_p0  ;;  %p1233_p6 = por %p90_p4, %p89_p3 }
   0xb   : > { %p826_p7 = scmp.ge.s32.totalorder %s1156_s18, 1  ;;  %p162_p8 = scmp.lt.s32.totalorder %s1156_s18, 3 }
   0xd   : > { %p163_p9 = pnand %p826_p7, %p162_p8 }
   0xe   : > { %v227_v0 = vld [vmem:[%s1647_s1] sm:$0xff] (!%p163_p9)  ;;  %v228_v1 = vld [vmem:[%s1647_s1 + $0x8] sm:$0xff] (!%p163_p9)  ;;  %v229_v2 = vld [vmem:[%s1647_s1 + $0x10] sm:$0xff] (!%p163_p9)  ;;  %s828_s7 = sshll.u32 (!%p163_p9), %s1210_s19, 5  ;;  %vm232_vm0 = vcmask (!%p163_p9), 326656   ;;  %s181_s22 = sand.u32 (!%p163_p9), 1, %s1148_s16  }
   0xf   : > { %166 = sbr.rel (%p163_p9) target bundleno = 399 (0x18f), region = 28  ;;  %v968_v3 = vpack.c.bf16 (!%p163_p9), %v228_v1, %v227_v0  ;;  %v230_v4 = vld [vmem:[%s1647_s1 + $0x18] sm:$0xff] (!%p163_p9)  ;;  %p189_p10 = scmp.lt.s32.totalorder (!%p163_p9), %s828_s7, 63  ;;  %v231_v6 = vld [vmem:[%s1647_s1 + $0x20] sm:$0xff] (!%p163_p9) }
  0x10   : > { %v972_v5 = vpack.c.bf16 (!%p163_p9), %v230_v4, %v229_v2  ;;  %s827_s23 = sshll.u32 (!%p163_p9), %s181_s22, 8  ;;  %p862_p11 = scmp.ne.s32.totalorder (!%p163_p9), %s1210_s19, 0 }
  0x11   : > { %969 = vmatprep.subr.bf16.mxu0 (!%p163_p9), %v968_v3  ;;  %976 = vmatprep.subr.bf16.mxu1 (!%p163_p9), %v968_v3  ;;  %s1331_s27 = scalar_lea.vmem (!%p163_p9), [#allocation2], %s827_s23 }
  0x12   : > { %971 = vmatpush3.bf16.msra.mxu0 (!%p163_p9), %v968_v3  ;;  %979 = vmatpush3.bf16.msra.mxu1 (!%p163_p9), %v968_v3 }
  0x13   : > { %973 = vmatprep.subr.bf16.mxu0 (!%p163_p9), %v972_v5  ;;  %977 = vmatprep.subr.bf16.mxu1 (!%p163_p9), %v972_v5 }
  0x16   : > { %s1658_s7 = smov (!%p189_p10, %s828_s7), 63  ;;  %975 = vmatpush3.bf16.msra.mxu0 %v972_v5  ;;  %980 = vmatpush3.bf16.msra.mxu1 %v972_v5 }
  0x17   : > { %s829_s10 = sshll.u32 %s1658_s7, 3  ;;  %918 = vmatprep.subr.mxu0 %v231_v6  ;;  %978 = vmatprep.subr.mxu1 %v231_v6 }
  0x18   : > { %s1258_s20 = scalar_lea.vmem %s1646_s0, %s829_s10 }
  0x19   : > { %v195_v7 = vld [vmem:[%s1258_s20] sm:$0xff]  ;;  %v196_v9 = vld [vmem:[%s1258_s20 + $0x8] sm:$0xff]  ;;  %v197_v11 = vld [vmem:[%s1258_s20 + $0x10] sm:$0xff] }
  0x1a   : > { %v211_v8 = vld [vmem:[%s1258_s20 + $0x80] sm:$0xff]  ;;  %920 = vmatprep.mubr.msk.f32.mxu0 %vm232_vm0, %v195_v7  ;;  %v212_v10 = vld [vmem:[%s1258_s20 + $0x88] sm:$0xff]  ;;  %v213_v12 = vld [vmem:[%s1258_s20 + $0x90] sm:$0xff]  ;;  %919 = vmatpush3.msra.mxu0 %v231_v6  ;;  %v1158_v7 = vmov (!%p862_p11), 0.0  }
  0x1b   : > { %944 = vmatprep.mubr.msk.f32.mxu1 %vm232_vm0, %v211_v8  ;;  %981 = vmatpush3.msra.mxu1 %v231_v6  ;;  %v198_v13 = vld [vmem:[%s1258_s20 + $0x18] sm:$0xff]  ;;  %v199_v15 = vld [vmem:[%s1258_s20 + $0x20] sm:$0xff]  ;;  %v200_v17 = vld [vmem:[%s1258_s20 + $0x28] sm:$0xff]  ;;  %590 = vst [vmem:[#allocation4] sm:$0x1] (!%p862_p11), %v1158_v7 }
  0x1c   : > { %921 = vmatmul.mubr.msk.f32.vlgmr.msra.gmra.mrb[0].mxu0 %vm232_vm0, %v196_v9  ;;  %945 = vmatmul.mubr.msk.f32.vlgmr.msra.gmra.mrb[0].mxu1 %vm232_vm0, %v212_v10  ;;  %v214_v14 = vld [vmem:[%s1258_s20 + $0x98] sm:$0xff]  ;;  %v215_v16 = vld [vmem:[%s1258_s20 + $0xa0] sm:$0xff]  ;;  %v216_v18 = vld [vmem:[%s1258_s20 + $0xa8] sm:$0xff]  ;;  %591 = vst [vmem:[#allocation6] sm:$0x1] (!%p862_p11), %v1158_v7 }
  0x1d   : > { %923 = vmatprep.mubr.msk.f32.mxu0 %vm232_vm0, %v197_v11  ;;  %947 = vmatprep.mubr.msk.f32.mxu1 %vm232_vm0, %v213_v12  ;;  %v201_v19 = vld [vmem:[%s1258_s20 + $0x30] sm:$0xff]  ;;  %v202_v21 = vld [vmem:[%s1258_s20 + $0x38] sm:$0xff]  ;;  %v203_v23 = vld [vmem:[%s1258_s20 + $0x40] sm:$0xff] }
  0x1e   : > { %v217_v20 = vld [vmem:[%s1258_s20 + $0xb0] sm:$0xff]  ;;  %v218_v22 = vld [vmem:[%s1258_s20 + $0xb8] sm:$0xff]  ;;  %v219_v24 = vld [vmem:[%s1258_s20 + $0xc0] sm:$0xff] }
  0x1f   : > { %v204_v25 = vld [vmem:[%s1258_s20 + $0x48] sm:$0xff]  ;;  %v205_v27 = vld [vmem:[%s1258_s20 + $0x50] sm:$0xff]  ;;  %v206_v29 = vld [vmem:[%s1258_s20 + $0x58] sm:$0xff] }
  0x20   : > { %924 = vmatmul.mubr.msk.f32.gmra.mrb[2].mxu0 %vm232_vm0, %v198_v13  ;;  %948 = vmatmul.mubr.msk.f32.gmra.mrb[2].mxu1 %vm232_vm0, %v214_v14  ;;  %v220_v26 = vld [vmem:[%s1258_s20 + $0xc8] sm:$0xff]  ;;  %v221_v28 = vld [vmem:[%s1258_s20 + $0xd0] sm:$0xff]  ;;  %v222_v30 = vld [vmem:[%s1258_s20 + $0xd8] sm:$0xff] }
  0x21   : > { %926 = vmatprep.mubr.msk.f32.mxu0 %vm232_vm0, %v199_v15  ;;  %950 = vmatprep.mubr.msk.f32.mxu1 %vm232_vm0, %v215_v16  ;;  %v207_v31 = vld [vmem:[%s1258_s20 + $0x60] sm:$0xff]  ;;  %v208_v33 = vld [vmem:[%s1258_s20 + $0x68] sm:$0xff]  ;;  %v209_v35 = vld [vmem:[%s1258_s20 + $0x70] sm:$0xff] }
  0x22   : > { %v223_v32 = vld [vmem:[%s1258_s20 + $0xe0] sm:$0xff]  ;;  %v224_v34 = vld [vmem:[%s1258_s20 + $0xe8] sm:$0xff]  ;;  %v225_v36 = vld [vmem:[%s1258_s20 + $0xf0] sm:$0xff] }
  0x23   : > { %v210_v37 = vld [vmem:[%s1258_s20 + $0x78] sm:$0xff] }
  0x24   : > { %927 = vmatmul.mubr.msk.f32.gmra.mrb[4].mxu0 %vm232_vm0, %v200_v17  ;;  %951 = vmatmul.mubr.msk.f32.gmra.mrb[4].mxu1 %vm232_vm0, %v216_v18  ;;  %v226_v38 = vld [vmem:[%s1258_s20 + $0xf8] sm:$0xff] }
  0x25   : > { %929 = vmatprep.mubr.msk.f32.mxu0 %vm232_vm0, %v201_v19  ;;  %953 = vmatprep.mubr.msk.f32.mxu1 %vm232_vm0, %v217_v20 }
  0x28   : > { %930 = vmatmul.mubr.msk.f32.gmra.mrb[6].mxu0 %vm232_vm0, %v202_v21  ;;  %954 = vmatmul.mubr.msk.f32.gmra.mrb[6].mxu1 %vm232_vm0, %v218_v22 }
  0x29   : > { %932 = vmatprep.mubr.msk.f32.mxu0 %vm232_vm0, %v203_v23  ;;  %956 = vmatprep.mubr.msk.f32.mxu1 %vm232_vm0, %v219_v24 }
  0x2c   : > { %933 = vmatmul.mubr.msk.f32.gmra.mrb[8].mxu0 %vm232_vm0, %v204_v25  ;;  %957 = vmatmul.mubr.msk.f32.gmra.mrb[8].mxu1 %vm232_vm0, %v220_v26 }
  0x2d   : > { %935 = vmatprep.mubr.msk.f32.mxu0 %vm232_vm0, %v205_v27  ;;  %959 = vmatprep.mubr.msk.f32.mxu1 %vm232_vm0, %v221_v28 }
  0x30   : > { %936 = vmatmul.mubr.msk.f32.gmra.mrb[10].mxu0 %vm232_vm0, %v206_v29  ;;  %960 = vmatmul.mubr.msk.f32.gmra.mrb[10].mxu1 %vm232_vm0, %v222_v30 }
  0x31   : > { %938 = vmatprep.mubr.msk.f32.mxu0 %vm232_vm0, %v207_v31  ;;  %962 = vmatprep.mubr.msk.f32.mxu1 %vm232_vm0, %v223_v32 }
  0x34   : > { %939 = vmatmul.mubr.msk.f32.gmra.mrb[12].mxu0 %vm232_vm0, %v208_v33  ;;  %963 = vmatmul.mubr.msk.f32.gmra.mrb[12].mxu1 %vm232_vm0, %v224_v34 }
  0x35   : > { %941 = vmatprep.mubr.msk.f32.mxu0 %vm232_vm0, %v209_v35  ;;  %965 = vmatprep.mubr.msk.f32.mxu1 %vm232_vm0, %v225_v36 }
  0x38   : > { %942 = vmatmul.mubr.msk.f32.gmra.mrb[14].mxu0 %vm232_vm0, %v210_v37  ;;  %966 = vmatmul.mubr.msk.f32.gmra.mrb[14].mxu1 %vm232_vm0, %v226_v38 }
  0xef   : > { %v1327_v39 = vpop.f32.mrb[0].mxu0  ;;  %v1329_v40 = vpop.f32.mrb[0].mxu1 }
  0xf0   : > { %555 = vst [vmem:[%s1331_s27 + $0x8] sm:$0xff] %v1327_v39  ;;  %571 = vst [vmem:[%s1331_s27 + $0x88] sm:$0xff] %v1329_v40  ;;  %v1337_v41 = vpop.f32.mrb[1].mxu0  ;;  %v1339_v42 = vpop.f32.mrb[1].mxu1 }
  0xf1   : > { %554 = vst [vmem:[%s1331_s27] sm:$0xff] %v1337_v41  ;;  %570 = vst [vmem:[%s1331_s27 + $0x80] sm:$0xff] %v1339_v42 }
  0xf3   : > { %v1345_v43 = vpop.f32.mrb[2].mxu0  ;;  %v1347_v44 = vpop.f32.mrb[2].mxu1 }
  0xf4   : > { %557 = vst [vmem:[%s1331_s27 + $0x18] sm:$0xff] %v1345_v43  ;;  %573 = vst [vmem:[%s1331_s27 + $0x98] sm:$0xff] %v1347_v44  ;;  %v1353_v45 = vpop.f32.mrb[3].mxu0  ;;  %v1355_v46 = vpop.f32.mrb[3].mxu1 }
  0xf5   : > { %556 = vst [vmem:[%s1331_s27 + $0x10] sm:$0xff] %v1353_v45  ;;  %572 = vst [vmem:[%s1331_s27 + $0x90] sm:$0xff] %v1355_v46 }
  0xf7   : > { %v1361_v47 = vpop.f32.mrb[4].mxu0  ;;  %v1363_v48 = vpop.f32.mrb[4].mxu1 }
  0xf8   : > { %559 = vst [vmem:[%s1331_s27 + $0x28] sm:$0xff] %v1361_v47  ;;  %575 = vst [vmem:[%s1331_s27 + $0xa8] sm:$0xff] %v1363_v48  ;;  %v1369_v49 = vpop.f32.mrb[5].mxu0  ;;  %v1371_v50 = vpop.f32.mrb[5].mxu1 }
  0xf9   : > { %558 = vst [vmem:[%s1331_s27 + $0x20] sm:$0xff] %v1369_v49  ;;  %574 = vst [vmem:[%s1331_s27 + $0xa0] sm:$0xff] %v1371_v50 }
  0xfb   : > { %v1377_v51 = vpop.f32.mrb[6].mxu0  ;;  %v1379_v52 = vpop.f32.mrb[6].mxu1 }
  0xfc   : > { %561 = vst [vmem:[%s1331_s27 + $0x38] sm:$0xff] %v1377_v51  ;;  %577 = vst [vmem:[%s1331_s27 + $0xb8] sm:$0xff] %v1379_v52  ;;  %v1385_v53 = vpop.f32.mrb[7].mxu0  ;;  %v1387_v54 = vpop.f32.mrb[7].mxu1 }
  0xfd   : > { %560 = vst [vmem:[%s1331_s27 + $0x30] sm:$0xff] %v1385_v53  ;;  %576 = vst [vmem:[%s1331_s27 + $0xb0] sm:$0xff] %v1387_v54 }
  0xff   : > { %v1393_v55 = vpop.f32.mrb[8].mxu0  ;;  %v1395_v56 = vpop.f32.mrb[8].mxu1 }
 0x100   : > { %563 = vst [vmem:[%s1331_s27 + $0x48] sm:$0xff] %v1393_v55  ;;  %579 = vst [vmem:[%s1331_s27 + $0xc8] sm:$0xff] %v1395_v56  ;;  %v1401_v57 = vpop.f32.mrb[9].mxu0  ;;  %v1403_v58 = vpop.f32.mrb[9].mxu1 }
 0x101   : > { %562 = vst [vmem:[%s1331_s27 + $0x40] sm:$0xff] %v1401_v57  ;;  %578 = vst [vmem:[%s1331_s27 + $0xc0] sm:$0xff] %v1403_v58 }
 0x103   : > { %v1409_v59 = vpop.f32.mrb[10].mxu0  ;;  %v1411_v60 = vpop.f32.mrb[10].mxu1 }
 0x104   : > { %565 = vst [vmem:[%s1331_s27 + $0x58] sm:$0xff] %v1409_v59  ;;  %581 = vst [vmem:[%s1331_s27 + $0xd8] sm:$0xff] %v1411_v60  ;;  %v1417_v61 = vpop.f32.mrb[11].mxu0  ;;  %v1419_v62 = vpop.f32.mrb[11].mxu1 }
 0x105   : > { %564 = vst [vmem:[%s1331_s27 + $0x50] sm:$0xff] %v1417_v61  ;;  %580 = vst [vmem:[%s1331_s27 + $0xd0] sm:$0xff] %v1419_v62 }
 0x107   : > { %v1425_v63 = vpop.f32.mrb[12].mxu0  ;;  %v1427_v0 = vpop.f32.mrb[12].mxu1  ;;  %589 = sbr.rel (%p862_p11) target bundleno = 270 (0x10e), region = 32 }
 0x108   : > { %567 = vst [vmem:[%s1331_s27 + $0x68] sm:$0xff] %v1425_v63  ;;  %583 = vst [vmem:[%s1331_s27 + $0xe8] sm:$0xff] %v1427_v0  ;;  %v1433_v1 = vpop.f32.mrb[13].mxu0  ;;  %v1435_v2 = vpop.f32.mrb[13].mxu1 }
 0x109   : > { %566 = vst [vmem:[%s1331_s27 + $0x60] sm:$0xff] %v1433_v1  ;;  %582 = vst [vmem:[%s1331_s27 + $0xe0] sm:$0xff] %v1435_v2 }
 0x10b   : > { %v1441_v3 = vpop.f32.mrb[14].mxu0  ;;  %v1443_v4 = vpop.f32.mrb[14].mxu1 }
 0x10c   : > { %569 = vst [vmem:[%s1331_s27 + $0x78] sm:$0xff] %v1441_v3  ;;  %585 = vst [vmem:[%s1331_s27 + $0xf8] sm:$0xff] %v1443_v4  ;;  %v1449_v5 = vpop.f32.mrb[15].mxu0  ;;  %v1451_v6 = vpop.f32.mrb[15].mxu1 }
 0x10d   : > { %568 = vst [vmem:[%s1331_s27 + $0x70] sm:$0xff] %v1449_v5  ;;  %584 = vst [vmem:[%s1331_s27 + $0xf0] sm:$0xff] %v1451_v6 }
 0x10e PF: > { %v593_v8 = vadd.f32 %v1327_v39, %v1337_v41  ;;  %s872_s28 = sshll.u32 %s1210_s19, 12  ;;  %s718_s6 = sshll.u32 %s1331_s27, 4  ;;  %v633_v11 = vmul.f32 %v1337_v41, %v1337_v41  ;;  %v634_v12 = vmul.f32 %v1327_v39, %v1327_v39  ;;  %s1469_s6 = int_to_ptr.vmem [resolvable:$true] %s718_s6 }
 0x10f   : > { %s1465_s5 = scalar_lea.hbm %s1648_s2, %s872_s28  ;;  %s1478_s7 = scalar_lea.sflag [#allocation3], %s181_s22 }
 0x110   : > { %v594_v9 = vadd.f32 %v593_v8, %v1353_v45  ;;  %s1038_s8 = scalar_lea.vmem %s1469_s6, 4096  ;;  %s1159_s9 = smov [#allocation2]  }
 0x111   : > { %p1039_p12 = scmp.ne.s32.totalorder %s1469_s6, %s1038_s8  ;;  %s1042_s10 = sshll.u32 %s1159_s9, 4  ;;  %s1043_s10 = int_to_ptr.vmem [resolvable:$false] %s1042_s10 }
 0x112   : > { %v595_v10 = vadd.f32 %v1345_v43, %v594_v9  ;;  %s1044_s11 = scalar_lea.vmem %s1043_s10, 8192  ;;  %p1045_p1 = scmp.lt.s32.totalorder %s1469_s6, %s1043_s10 }
 0x113   : > { %p1040_p13 = pnand %p1039_p12, %p1229_p5  ;;  %p1046_p3 = scmp.lt.s32.totalorder %s1044_s11, %s1038_s8 }
 0x114   : > { %v596_v13 = vadd.f32 %v595_v10, %v1369_v49 }
 0x115   : > { %p1041_p0 = pneg %p1040_p13  ;;  %p1047_p4 = por %p1046_p3, %p1045_p1 }
 0x117   : > { %p1048_p7 = pnand %p1047_p4, %p1041_p0 }
 0x119   : > { %1051 = shalt.err (!%p1048_p7)
}
 0x11a   : > { %s1052_s12 = scalar_lea.hbm %s1465_s5, 4096  ;;  %s1056_s20 = scalar_lea.hbm %s1648_s2, 8192 }
 0x11b   : > { %p1053_p8 = scmp.ne.s32.totalorder %s1465_s5, %s1052_s12  ;;  %p1057_p11 = scmp.lt.u32.totalorder %s1465_s5, %s1648_s2 }
 0x11c   : > { %p1058_p12 = scmp.lt.u32.totalorder %s1056_s20, %s1052_s12  ;;  %p1060_p0 = scmp.lt.u32.totalorder %s1052_s12, %s1465_s5 }
 0x11d   : > { %p1054_p9 = pnand %p1053_p8, %p1229_p5 }
 0x11e   : > { %p1059_p13 = por %p1058_p12, %p1057_p11 }
 0x11f   : > { %p1055_p10 = pneg %p1054_p9 }
 0x120   : > { %p1061_p1 = por %p1060_p0, %p1059_p13 }
 0x122   : > { %p1062_p3 = pnand %p1061_p1, %p1055_p10 }
 0x124   : > { %1065 = shalt.err (!%p1062_p3)
}
 0x125   : > { %s1160_s27 = smov 128   ;;  %s1161_s28 = smov 8   ;;  %v635_v14 = vmul.f32 %v1353_v45, %v1353_v45  ;;  %v597_v15 = vadd.f32 %v1361_v47, %v596_v13  ;;  %v636_v16 = vmul.f32 %v1345_v43, %v1345_v43  ;;  %v665_v17 = vadd.f32 %v634_v12, %v633_v11 }
 0x126   : > { %982 = dma.vmem_to_hbm [thread:$0]  (%p1229_p5), %s1469_s6, 4096, %s1465_s5, %s1478_s7, %s1160_s27, %s1160_s27, %s1161_s28   ;;  %v637_v19 = vmul.f32 %v1369_v49, %v1369_v49  ;;  %v638_v22 = vmul.f32 %v1361_v47, %v1361_v47  ;;  %v639_v25 = vmul.f32 %v1385_v53, %v1385_v53  ;;  %v640_v28 = vmul.f32 %v1377_v51, %v1377_v51 }
 0x127   : > { %v598_v18 = vadd.f32 %v597_v15, %v1385_v53  ;;  %v666_v20 = vadd.f32 %v665_v17, %v635_v14  ;;  %v641_v31 = vmul.f32 %v1401_v57, %v1401_v57  ;;  %v642_v34 = vmul.f32 %v1393_v55, %v1393_v55  ;;  %s1162_s25 = smov [#allocation4]  }
 0x128   : > { %v643_v37 = vmul.f32 %v1417_v61, %v1417_v61  ;;  %v644_v41 = vmul.f32 %v1409_v59, %v1409_v59  ;;  %v645_v47 = vmul.f32 %v1433_v1, %v1433_v1  ;;  %v646_v53 = vmul.f32 %v1425_v63, %v1425_v63  ;;  %s732_s29 = sshll.u32 %s1162_s25, 4  ;;  %s733_s29 = int_to_ptr.vmem [resolvable:$true] %s732_s29 }
 0x129   : > { %v599_v21 = vadd.f32 %v1377_v51, %v598_v18  ;;  %v667_v23 = vadd.f32 %v666_v20, %v636_v16  ;;  %v648_v8 = vmul.f32 %v1441_v3, %v1441_v3  ;;  %v649_v10 = vmul.f32 %v1339_v42, %v1339_v42  ;;  %s1066_s30 = scalar_lea.vmem %s733_s29, 16  ;;  %s1072_s5 = scalar_lea.vmem %s733_s29, 32 }
 0x12a   : > { %v650_v12 = vmul.f32 %v1329_v40, %v1329_v40  ;;  %v651_v14 = vmul.f32 %v1355_v46, %v1355_v46  ;;  %v652_v16 = vmul.f32 %v1347_v44, %v1347_v44  ;;  %v653_v18 = vmul.f32 %v1371_v50, %v1371_v50  ;;  %p1067_p5 = scmp.ne.s32.totalorder %s733_s29, %s1066_s30  ;;  %p1073_p8 = scmp.lt.s32.totalorder %s733_s29, %s733_s29 }
 0x12b   : > { %v600_v24 = vadd.f32 %v599_v21, %v1401_v57  ;;  %v668_v26 = vadd.f32 %v667_v23, %v637_v19  ;;  %v654_v20 = vmul.f32 %v1363_v48, %v1363_v48  ;;  %p1074_p9 = scmp.lt.s32.totalorder %s1072_s5, %s1066_s30 }
 0x12c   : > { %p1068_p4 = pnand %p1067_p5, %p84_p2 }
 0x12d   : > { %v601_v27 = vadd.f32 %v1393_v55, %v600_v24  ;;  %v669_v29 = vadd.f32 %v668_v26, %v638_v22  ;;  %v655_v22 = vmul.f32 %v1387_v54, %v1387_v54  ;;  %v656_v24 = vmul.f32 %v1379_v52, %v1379_v52  ;;  %p1075_p10 = por %p1074_p9, %p1073_p8 }
 0x12e   : > { %v657_v26 = vmul.f32 %v1403_v58, %v1403_v58  ;;  %p1069_p7 = pneg %p1068_p4 }
 0x12f   : > { %v602_v30 = vadd.f32 %v601_v27, %v1417_v61  ;;  %v670_v32 = vadd.f32 %v669_v29, %v639_v25  ;;  %v647_v61 = vmul.f32 %v1449_v5, %v1449_v5 }
 0x130   : > { %p1076_p11 = pnand %p1075_p10, %p1069_p7 }
 0x131   : > { %v603_v33 = vadd.f32 %v1409_v59, %v602_v30  ;;  %v671_v35 = vadd.f32 %v670_v32, %v640_v28  ;;  %v658_v28 = vmul.f32 %v1395_v56, %v1395_v56  ;;  %v659_v30 = vmul.f32 %v1419_v62, %v1419_v62 }
 0x132   : > { %v660_v32 = vmul.f32 %v1411_v60, %v1411_v60 }
 0x133   : > { %v604_v36 = vadd.f32 %v603_v33, %v1433_v1  ;;  %v672_v38 = vadd.f32 %v671_v35, %v641_v31 }
 0x135   : > { %v605_v39 = vadd.f32 %v1425_v63, %v604_v36  ;;  %v673_v43 = vadd.f32 %v672_v38, %v642_v34  ;;  %v661_v34 = vmul.f32 %v1435_v2, %v1435_v2  ;;  %v662_v36 = vmul.f32 %v1427_v0, %v1427_v0 }
 0x136   : > { %v663_v38 = vmul.f32 %v1451_v6, %v1451_v6 }
 0x137   : > { %v606_v45 = vadd.f32 %v605_v39, %v1449_v5  ;;  %v674_v49 = vadd.f32 %v673_v43, %v643_v37 }
 0x139   : > { %v607_v51 = vadd.f32 %v1441_v3, %v606_v45  ;;  %v675_v55 = vadd.f32 %v674_v49, %v644_v41 }
 0x13b   : > { %v608_v57 = vadd.f32 %v607_v51, %v1339_v42  ;;  %v676_v7 = vadd.f32 %v675_v55, %v645_v47 }
 0x13d   : > { %v609_v59 = vadd.f32 %v1329_v40, %v608_v57  ;;  %v677_v9 = vadd.f32 %v676_v7, %v646_v53  ;;  %v592_v53 = vld [vmem:[#allocation4] sm:$0x1] }
 0x13f   : > { %v610_v1 = vadd.f32 %v609_v59, %v1355_v46  ;;  %v678_v11 = vadd.f32 %v677_v9, %v647_v61 }
 0x141   : > { %v611_v63 = vadd.f32 %v1347_v44, %v610_v1  ;;  %v679_v13 = vadd.f32 %v678_v11, %v648_v8 }
 0x143   : > { %v612_v5 = vadd.f32 %v611_v63, %v1371_v50  ;;  %v680_v15 = vadd.f32 %v679_v13, %v649_v10 }
 0x145   : > { %v613_v3 = vadd.f32 %v1363_v48, %v612_v5  ;;  %v681_v17 = vadd.f32 %v680_v15, %v650_v12 }
 0x147   : > { %v614_v42 = vadd.f32 %v613_v3, %v1387_v54  ;;  %v682_v19 = vadd.f32 %v681_v17, %v651_v14 }
 0x149   : > { %v615_v40 = vadd.f32 %v1379_v52, %v614_v42  ;;  %v683_v21 = vadd.f32 %v682_v19, %v652_v16 }
 0x14b   : > { %v616_v46 = vadd.f32 %v615_v40, %v1403_v58  ;;  %v684_v23 = vadd.f32 %v683_v21, %v653_v18 }
 0x14d   : > { %v617_v44 = vadd.f32 %v1395_v56, %v616_v46  ;;  %v685_v25 = vadd.f32 %v684_v23, %v654_v20 }
 0x14f   : > { %v618_v50 = vadd.f32 %v617_v44, %v1419_v62  ;;  %v686_v27 = vadd.f32 %v685_v25, %v655_v22 }
 0x151   : > { %v619_v48 = vadd.f32 %v1411_v60, %v618_v50  ;;  %v687_v29 = vadd.f32 %v686_v27, %v656_v24  ;;  %v664_v60 = vmul.f32 %v1443_v4, %v1443_v4 }
 0x153   : > { %v620_v54 = vadd.f32 %v619_v48, %v1435_v2  ;;  %v688_v31 = vadd.f32 %v687_v29, %v657_v26 }
 0x155   : > { %v621_v52 = vadd.f32 %v1427_v0, %v620_v54  ;;  %v689_v33 = vadd.f32 %v688_v31, %v658_v28 }
 0x157   : > { %v622_v58 = vadd.f32 %v621_v52, %v1451_v6  ;;  %v690_v35 = vadd.f32 %v689_v33, %v659_v30 }
 0x159   : > { %v623_v56 = vadd.f32 %v1443_v4, %v622_v58  ;;  %v691_v37 = vadd.f32 %v690_v35, %v660_v32 }
 0x15b   : > { %v624_v62 = vrot.slane %v623_v56, 4  ;;  %v692_v39 = vadd.f32 %v691_v37, %v661_v34 }
 0x15d   : > { %v625_v41 = vadd.f32 %v624_v62, %v623_v56  ;;  %v693_v43 = vadd.f32 %v692_v39, %v662_v36 }
 0x15f   : > { %v626_v45 = vrot.slane %v625_v41, 2  ;;  %v694_v47 = vadd.f32 %v693_v43, %v663_v38 }
 0x161   : > { %v627_v2 = vadd.f32 %v626_v45, %v625_v41  ;;  %v695_v49 = vadd.f32 %v694_v47, %v664_v60 }
 0x163   : > { %v628_v51 = vrot.slane %v627_v2, 1  ;;  %v696_v55 = vrot.slane %v695_v49, 4 }
 0x165   : > { %v629_v0 = vadd.f32 %v628_v51, %v627_v2  ;;  %v697_v57 = vadd.f32 %v696_v55, %v695_v49 }
 0x167   : > { %v630_v61 = vadd.f32 %v629_v0, %v592_v53  ;;  %v698_v6 = vrot.slane %v697_v57, 2 }
 0x169   : > { %631 = vst [vmem:[#allocation4] sm:$0x1] %v630_v61  ;;  %v699_v7 = vadd.f32 %v698_v6, %v697_v57 }
 0x16a   : > { %1079 = shalt.err (!%p1076_p11)
}
 0x16b   : > { %s1080_s8 = scalar_lea.hbm %s1649_s3, 16 }
 0x16c   : > { %p1081_p12 = scmp.ne.s32.totalorder %s1649_s3, %s1080_s8  ;;  %p1086_p1 = scmp.lt.u32.totalorder %s1080_s8, %s1649_s3 }
 0x16e   : > { %p1082_p13 = pnand %p1081_p12, %p84_p2 }
 0x170   : > { %p1083_p0 = pneg %p1082_p13 }
 0x172   : > { %p1088_p3 = pnand %p1086_p1, %p1083_p0 }
 0x174   : > { %1091 = shalt.err (!%p1088_p3)
}
 0x175   : > { %984 = dma.vmem_to_hbm [thread:$0]  (%p84_p2), %s733_s29, 16, %s1649_s3, [#allocation5]   ;;  %v700_v4 = vrot.slane %v699_v7, 1  ;;  %v632_v59 = vld [vmem:[#allocation6] sm:$0x1] }
 0x176   : > { %s1163_s20 = smov [#allocation6]  }
 0x177   : > { %s743_s22 = sshll.u32 %s1163_s20, 4  ;;  %v701_v8 = vadd.f32 %v700_v4, %v699_v7  ;;  %s744_s22 = int_to_ptr.vmem [resolvable:$true] %s743_s22 }
 0x178   : > { %s1092_s23 = scalar_lea.vmem %s744_s22, 16  ;;  %s1098_s27 = scalar_lea.vmem %s744_s22, 32 }
 0x179   : > { %v702_v9 = vadd.f32 %v701_v8, %v632_v59  ;;  %p1093_p5 = scmp.ne.s32.totalorder %s744_s22, %s1092_s23  ;;  %p1099_p8 = scmp.lt.s32.totalorder %s744_s22, %s744_s22 }
 0x17a   : > { %p1100_p9 = scmp.lt.s32.totalorder %s1098_s27, %s1092_s23 }
 0x17b   : > { %703 = vst [vmem:[#allocation6] sm:$0x1] %v702_v9  ;;  %p1094_p4 = pnand %p1093_p5, %p84_p2 }
 0x17c   : > { %p1101_p10 = por %p1100_p9, %p1099_p8 }
 0x17d   : > { %p1095_p7 = pneg %p1094_p4 }
 0x17f   : > { %p1102_p11 = pnand %p1101_p10, %p1095_p7 }
 0x181   : > { %1105 = shalt.err (!%p1102_p11)
}
 0x182   : > { %s1106_s29 = scalar_lea.hbm %s1650_s4, 16 }
 0x183   : > { %p1107_p12 = scmp.ne.s32.totalorder %s1650_s4, %s1106_s29  ;;  %p1112_p1 = scmp.lt.u32.totalorder %s1106_s29, %s1650_s4 }
 0x185   : > { %p1108_p13 = pnand %p1107_p12, %p84_p2 }
 0x187   : > { %p1109_p0 = pneg %p1108_p13 }
 0x189   : > { %p1114_p3 = pnand %p1112_p1, %p1109_p0 }
 0x18b   : > { %1117 = shalt.err (!%p1114_p3)
}
 0x18c   : > { %986 = dma.vmem_to_hbm [thread:$0]  (%p84_p2), %s744_s22, 16, %s1650_s4, [#allocation5]  }
 0x18d   : > { %1135 = dma.done.wait (%p84_p2), [#allocation5], 32  }
 0x18e   : > { %1137 = vsyncadd (%p84_p2), [#allocation5], 4294967264 }
 0x18f PF: > { %p1000_p5 = scmp.ge.s32.totalorder %s1156_s18, 2  ;;  %s763_s10 = sand.u32 1, %s1144_s15  }
 0x190   : > { %s764_s11 = scalar_lea.sflag [#allocation3], %s763_s10 }
 0x191   : > { %p993_p4 = pnand %p1000_p5, %p1233_p6 }
 0x193   : > { %1139 = dma.done.wait (!%p993_p4), %s764_s11, 4096  }
 0x194   : > { %1141 = vsyncadd (!%p993_p4), %s764_s11, 4294963200  ;;  %p16_p7 = scmp.ge.s32.totalorder %s1214_s21, 4   ;;  %s1653_s15 = smov %s1148_s16 }
 0x195   : > { %s1654_s16 = smov %s1152_s17  ;;  %s1655_s17 = smov %s1225_s24 }
 0x196   : > { %s1656_s18 = smov %s1214_s21  ;;  %18 = sbr.rel (!%p16_p7) target bundleno = 4 (0x4), region = 83 }
 0x19d   :  { %769 = vsyncpa [#allocation3], 1 }
 0x19e   :  { %771 = vsyncpa [#allocation3 + $0x1], 1 }
 0x19f   :  { %772 = vsyncpa [#allocation5], 1 }

</bundles_post_ra>
